<compile_context>
chip_gen: v5e
topology: v5e:2x2
jax: 0.10.0
libtpu: 0.0.40
codegen_flags: <defaults>
</compile_context>

<pallas_src>
import functools

import jax
import jax.numpy as jnp
from jax.experimental import pallas as pl
from jax.experimental.pallas import tpu as pltpu


# -----------------------------------------------------------------------------
# Fused conv1d + pooling kernel (shared by BlockA and BlockB).
#
#   x_ref : (bt, Lp, D)              NLC batch tile, tail-padded to Lp = L+ws_max-1
#   w_ref : (ws_max, D, n_ws*Fo)     all window sizes packed on the lane axis
#   b_ref : (1, n_ws*Fo)             packed biases
#   o_ref : (bt, 1, pack_padded)     lane-dense packed output (padded to %128)
# -----------------------------------------------------------------------------
def _fused_conv_pool_kernel(x_ref, w_ref, b_ref, o_ref, *,
                            L, l_outs, fo, poolings,
                            pack_width, pack_padded, use_bf16):
    n_ws = len(l_outs)
    fo_total = n_ws * fo

    x = x_ref[...]                        # (bt, Lp, D)
    w = w_ref[...]                        # (ws_max, D, fo_total)
    bt = x.shape[0]
    ws_max = w.shape[0]
    if use_bf16:
        x = x.astype(jnp.bfloat16)
        w = w.astype(jnp.bfloat16)

    # Shift-and-accumulate conv: ws_max batched matmuls, all window sizes fused
    # in the N (lane) dimension.  No im2col lane concat, no (bt,L) reshape.
    conv = None
    for k in range(ws_max):
        xk = x[:, k:k + L, :]                                    # (bt, L, D)
        wk = jnp.broadcast_to(w[k][None], (bt,) + w[k].shape)    # (bt, D, fo_total)
        ck = jnp.einsum("bld,bdf->blf", xk, wk,
                        preferred_element_type=jnp.float32)
        conv = ck if conv is None else conv + ck
    conv = conv + b_ref[...][None]                               # (1,1,fo_total)

    # Per-ws valid-row mask: rows t >= l_out_i were computed over the zero tail
    # padding and must be excluded from pooling.  Built from iota (static).
    t_idx = jax.lax.broadcasted_iota(jnp.int32, (L, fo_total), 0)
    lane2 = jax.lax.broadcasted_iota(jnp.int32, (L, fo_total), 1)
    lane1 = jax.lax.broadcasted_iota(jnp.int32, (1, fo_total), 1)
    valid = jnp.zeros((L, fo_total), jnp.bool_)
    inv_len = jnp.zeros((1, fo_total), jnp.float32)
    for wi, lo in enumerate(l_outs):
        blk2 = (lane2 >= wi * fo) & (lane2 < (wi + 1) * fo)
        valid = valid | (blk2 & (t_idx < lo))
        blk1 = (lane1 >= wi * fo) & (lane1 < (wi + 1) * fo)
        inv_len = inv_len + jnp.where(blk1, 1.0 / float(lo), 0.0)
    valid = valid[None]                                          # (1, L, fo_total)
    fmin = jnp.finfo(jnp.float32).min

    pooled = {}
    if "max" in poolings:
        pooled["max"] = jnp.max(jnp.where(valid, conv, fmin), axis=1)
    if "min" in poolings:    # torch MyMinPool1d: max(-x), NOT re-negated
        pooled["min"] = jnp.max(jnp.where(valid, -conv, fmin), axis=1)
    if "mean" in poolings:
        pooled["mean"] = jnp.sum(jnp.where(valid, conv, 0.0), axis=1) * inv_len

    # Single lane-dense store; column = (p*n_ws + wi)*Fo + f, zero-padded to %128.
    parts = [pooled[p] for p in poolings]
    if pack_padded > pack_width:
        parts.append(jnp.zeros((bt, pack_padded - pack_width), jnp.float32))
    o_ref[...] = jnp.concatenate(parts, axis=-1)[:, None, :]


def _fused_forward(x_bdl, w_all, b_all, wss, fo, poolings, use_bf16=False):
    """x_bdl: (B, D, L) NCW.  w_all: (ws_max, D, n_ws*fo).  b_all: (1, n_ws*fo).
    Returns (B, n_pool, n_ws, fo) float32."""
    B, D, L = (int(s) for s in x_bdl.shape)
    n_ws = len(wss)
    n_pool = len(poolings)
    for p in poolings:
        if p not in ("max", "min", "mean"):
            raise ValueError(p)
    ws_max = max(int(ws) for ws in wss)
    l_outs = tuple(int(L - ws + 1) for ws in wss)
    Lp = L + ws_max - 1
    fo = int(fo)
    fo_total = n_ws * fo
    pack_width = n_pool * fo_total
    pack_padded = ((pack_width + 127) // 128) * 128     # lane-dense output store

    # NCW -> NLC + tail zero pad once in XLA, so the kernel sees plain sublane
    # shift windows (no in-kernel transpose / lane concat / reshape).
    x_nlc = jnp.transpose(x_bdl, (0, 2, 1)).astype(jnp.float32)
    if ws_max > 1:
        x_nlc = jnp.pad(x_nlc, ((0, 0), (0, ws_max - 1), (0, 0)))

    # Only split the batch when each half still gives a reasonably full MXU M;
    # v5e/v6e are single-core so splitting tiny work only adds grid overhead.
    # TODO(synk): on v7x use pltpu.CORE_PARALLEL / pl.core_map to shard the
    # batch axis across the 2 TensorCores when the per-core work is large, and
    # tile L with a ws_max-1 halo (running max/sum accumulators) for long
    # sequences so the per-step VMEM stays within v7x's 64 MiB.
    n_bt = 2 if (B % 2 == 0 and (B // 2) * L >= 256) else 1
    bt = B // n_bt

    kernel = functools.partial(
        _fused_conv_pool_kernel, L=L, l_outs=l_outs, fo=fo,
        poolings=tuple(poolings), pack_width=pack_width,
        pack_padded=pack_padded, use_bf16=use_bf16)

    flops = 2 * B * sum(lo * ws * D * fo for lo, ws in zip(l_outs, wss))
    bytes_accessed = 4 * (B * Lp * D + int(w_all.size) + int(b_all.size)
                          + B * pack_padded)

    out = pl.pallas_call(
        kernel,
        out_shape=jax.ShapeDtypeStruct((B, 1, pack_padded), jnp.float32),
        grid=(n_bt,),
        in_specs=[
            pl.BlockSpec((bt, Lp, D), lambda i: (i, 0, 0)),
            pl.BlockSpec(tuple(int(s) for s in w_all.shape), lambda i: (0, 0, 0)),
            pl.BlockSpec(tuple(int(s) for s in b_all.shape), lambda i: (0, 0)),
        ],
        out_specs=pl.BlockSpec((bt, 1, pack_padded), lambda i: (i, 0, 0)),
        compiler_params=pltpu.CompilerParams(
            dimension_semantics=("parallel",) if n_bt > 1 else ("arbitrary",)),
        cost_estimate=pl.CostEstimate(
            flops=flops, transcendentals=0, bytes_accessed=bytes_accessed),
    )(x_nlc, w_all, b_all)

    return out[:, 0, :pack_width].reshape(B, n_pool, n_ws, fo)


# -----------------------------------------------------------------------------
# Parameter packing (hoisted into __init__, not re-done per call)
# -----------------------------------------------------------------------------
def pack_block_a_params(weights, biases):
    """weights[i]: (ws_i, D, F); biases[i]: (1, F) -> (ws_max, D, n_ws*F), (1, n_ws*F)."""
    ws_max = max(int(w.shape[0]) for w in weights)
    cols_w, cols_b = [], []
    for w, b in zip(weights, biases):
        ws_i = int(w.shape[0])
        F = int(w.shape[-1])
        cols_w.append(jnp.pad(w, ((0, ws_max - ws_i), (0, 0), (0, 0))))
        cols_b.append(b.reshape(1, F))
    return jnp.concatenate(cols_w, axis=-1), jnp.concatenate(cols_b, axis=-1)


def pack_block_b_params(weights, biases):
    """Grouped conv as block-diagonal per-tap matmul.
    weights[i]: (ws_i, D, F); biases[i]: (D, F) -> (ws_max, D, n_ws*D*F), (1, n_ws*D*F).
    TODO(synk): for D >> 32 this wastes D x MXU flops / weight VMEM; switch to a
    lane-repeated VPU FMA grouped-conv path in that regime."""
    ws_max = max(int(w.shape[0]) for w in weights)
    cols_w, cols_b = [], []
    for w, b in zip(weights, biases):
        ws_i, D, F = (int(s) for s in w.shape)
        eye = jnp.eye(D, dtype=w.dtype)
        wbd = jnp.einsum("ed,kdf->kedf", eye, w).reshape(ws_i, D, D * F)
        cols_w.append(jnp.pad(wbd, ((0, ws_max - ws_i), (0, 0), (0, 0))))
        cols_b.append(b.reshape(1, D * F))
    return jnp.concatenate(cols_w, axis=-1), jnp.concatenate(cols_b, axis=-1)


# -----------------------------------------------------------------------------
# Block forwards
# -----------------------------------------------------------------------------
def block_a_forward(x_bdl, w_packed, b_packed, wss, F, poolings, use_bf16=False):
    """Returns (B, n_pool, n_ws, F)."""
    return _fused_forward(x_bdl, w_packed, b_packed, wss, F, poolings, use_bf16)


def block_b_forward(x_bdl, w_packed, b_packed, wss, D, F, poolings, use_bf16=False):
    """Returns (B, n_pool, n_ws, D, F)."""
    out = _fused_forward(x_bdl, w_packed, b_packed, wss, D * F, poolings, use_bf16)
    return out.reshape(out.shape[0], len(poolings), len(wss), D, F)


# -----------------------------------------------------------------------------
# SentenceModel wrapper (parameter setup + block dispatch = plain JAX glue)
# -----------------------------------------------------------------------------
class SentenceModelPallas:
    def __init__(self, *, word_vector_dim, wss_a, filter_number_a, poolings_a,
                 wss_b, filter_number_b, poolings_b, key, use_bf16_matmul=False):
        # use_bf16_matmul trades ~1e-2 accuracy for MXU throughput on v6e/v7x.
        self.D = word_vector_dim
        self.use_bf16 = use_bf16_matmul
        self.cfg = {
            "BlockA": dict(wss=tuple(wss_a), F=filter_number_a,
                           poolings=tuple(poolings_a)),
            "BlockB": dict(wss=tuple(wss_b), F=filter_number_b,
                           poolings=tuple(poolings_b)),
        }
        n_keys = 2 * (len(wss_a) + len(wss_b))
        keys = jax.random.split(key, n_keys)
        ki = iter(range(n_keys))
        # BlockA params: Conv1d weight (F, D, ws) -> stored as (ws, D, F)
        self.wa, self.ba = [], []
        for ws in wss_a:
            self.wa.append(0.1 * jax.random.normal(
                keys[next(ki)], (ws, word_vector_dim, filter_number_a), jnp.float32))
            self.ba.append(0.1 * jax.random.normal(
                keys[next(ki)], (1, filter_number_a), jnp.float32))
        # BlockB params: grouped Conv1d weight (D*F, 1, ws) -> stored as (ws, D, F)
        self.wb, self.bb = [], []
        for ws in wss_b:
            self.wb.append(0.1 * jax.random.normal(
                keys[next(ki)], (ws, word_vector_dim, filter_number_b), jnp.float32))
            self.bb.append(0.1 * jax.random.normal(
                keys[next(ki)], (word_vector_dim, filter_number_b), jnp.float32))
        # Packed (fused across window sizes) parameters, built once.
        self.wa_packed, self.ba_packed = pack_block_a_params(self.wa, self.ba)
        self.wb_packed, self.bb_packed = pack_block_b_params(self.wb, self.bb)
        self.current_block = None

    def change_current_block(self, name):
        assert name in self.cfg
        self.current_block = name

    def __call__(self, x_bdl):
        # x_bdl: (B, D, L) NCW, exactly as torch Conv1d expects.
        if self.current_block == "BlockA":
            c = self.cfg["BlockA"]
            return block_a_forward(x_bdl, self.wa_packed, self.ba_packed,
                                   c["wss"], c["F"], c["poolings"], self.use_bf16)
        elif self.current_block == "BlockB":
            c = self.cfg["BlockB"]
            return block_b_forward(x_bdl, self.wb_packed, self.bb_packed,
                                   c["wss"], self.D, c["F"], c["poolings"],
                                   self.use_bf16)
        raise RuntimeError("call change_current_block() first")


# -----------------------------------------------------------------------------
# Pure-JAX references (for correctness check only)
# -----------------------------------------------------------------------------
def _ref_pool(conv, pooling, axis):
    if pooling == "max":
        return conv.max(axis=axis)
    if pooling == "min":
        return (-conv).max(axis=axis)
    return conv.mean(axis=axis)


def ref_block_a(x_bdl, weights, biases, poolings):
    B, D, L = x_bdl.shape
    per_pool = []
    for pooling in poolings:
        per_ws = []
        for w, b in zip(weights, biases):
            ws, _, F = w.shape
            l_out = L - ws + 1
            conv = jnp.zeros((B, l_out, F), jnp.float32)
            for k in range(ws):
                conv = conv + jnp.einsum("bdt,df->btf",
                                         x_bdl[:, :, k:k + l_out], w[k])
            conv = conv + b[0][None, None, :]
            per_ws.append(_ref_pool(conv, pooling, axis=1))
        per_pool.append(jnp.stack(per_ws, axis=1))
    return jnp.stack(per_pool, axis=1)


def ref_block_b(x_bdl, weights, biases, poolings):
    B, D, L = x_bdl.shape
    per_pool = []
    for pooling in poolings:
        per_ws = []
        for w, b in zip(weights, biases):
            ws, _, F = w.shape
            l_out = L - ws + 1
            conv = jnp.zeros((B, l_out, D, F), jnp.float32)
            for k in range(ws):
                conv = conv + x_bdl[:, :, k:k + l_out].transpose(0, 2, 1)[..., None] \
                              * w[k][None, None, :, :]
            conv = conv + b[None, None, :, :]
            per_ws.append(_ref_pool(conv, pooling, axis=1))
        per_pool.append(jnp.stack(per_ws, axis=1))
    return jnp.stack(per_pool, axis=1)


if __name__ == "__main__":
    key = jax.random.PRNGKey(0)
    B, D, L = 2, 16, 12  # batch, word_vector_dim, sequence length

    model = SentenceModelPallas(
        word_vector_dim=D,
        wss_a=(2, 3), filter_number_a=8, poolings_a=("max", "min", "mean"),
        wss_b=(2, 3), filter_number_b=4, poolings_b=("max", "mean"),
        key=key,
    )

    x = jax.random.normal(jax.random.PRNGKey(1), (B, D, L), jnp.float32)

    # BlockA path
    model.change_current_block("BlockA")
    out_a = jax.block_until_ready(model(x))
    ref_a = ref_block_a(x, model.wa, model.ba, model.cfg["BlockA"]["poolings"])
    assert out_a.shape == (B, 3, 2, 8), out_a.shape
    assert jnp.allclose(out_a, ref_a, atol=1e-5, rtol=1e-5)

    # BlockB path
    model.change_current_block("BlockB")
    out_b = jax.block_until_ready(model(x))
    ref_b = ref_block_b(x, model.wb, model.bb, model.cfg["BlockB"]["poolings"])
    assert out_b.shape == (B, 2, 2, D, 4), out_b.shape
    assert jnp.allclose(out_b, ref_b, atol=1e-5, rtol=1e-5)

    print("KERNEL_OK")
</pallas_src>

<mosaic_0001>
module attributes {stable_mosaic.version = 11 : i64} {
  func.func @_fused_conv_pool_kernel(%arg0: i32, %arg1: memref<2x14x16xf32, #tpu.memory_space<vmem>>, %arg2: memref<3x16x16xf32, #tpu.memory_space<vmem>>, %arg3: memref<1x16xf32, #tpu.memory_space<vmem>>, %arg4: memref<2x1x128xf32, #tpu.memory_space<vmem>>) attributes {dimension_semantics = [#tpu.dimension_semantics<arbitrary>], iteration_bounds = array<i64: 1>, scalar_prefetch = 0 : i64, scratch_operands = 0 : i64, tpu.core_type = #tpu.core_type<tc>, window_params = [{transform_indices = @transform_0, window_bounds = array<i64: 2, 14, 16>}, {pipeline_mode = #tpu.pipeline_mode<synchronous>, transform_indices = @transform_1, window_bounds = array<i64: 3, 16, 16>}, {pipeline_mode = #tpu.pipeline_mode<synchronous>, transform_indices = @transform_2, window_bounds = array<i64: 1, 16>}, {transform_indices = @transform_3, window_bounds = array<i64: 2, 1, 128>}]} {
    %c0 = arith.constant 0 : index
    %c0_0 = arith.constant 0 : index
    %c0_1 = arith.constant 0 : index
    %0 = vector.load %arg1[%c0, %c0_0, %c0_1] : memref<2x14x16xf32, #tpu.memory_space<vmem>>, vector<2x14x16xf32>
    %c0_2 = arith.constant 0 : index
    %c0_3 = arith.constant 0 : index
    %c0_4 = arith.constant 0 : index
    %1 = vector.load %arg2[%c0_2, %c0_3, %c0_4] : memref<3x16x16xf32, #tpu.memory_space<vmem>>, vector<3x16x16xf32>
    %2 = vector.extract_strided_slice %0 {offsets = [0, 0, 0], sizes = [2, 12, 16], strides = [1, 1, 1]} : vector<2x14x16xf32> to vector<2x12x16xf32>
    %3 = vector.extract_strided_slice %1 {offsets = [0, 0, 0], sizes = [1, 16, 16], strides = [1, 1, 1]} : vector<3x16x16xf32> to vector<1x16x16xf32>
    %4 = vector.shape_cast %3 : vector<1x16x16xf32> to vector<16x16xf32>
    %5 = vector.shape_cast %4 : vector<16x16xf32> to vector<1x16x16xf32>
    %6 = vector.shape_cast %5 : vector<1x16x16xf32> to vector<1x16x16xf32>
    %7 = vector.broadcast %6 : vector<1x16x16xf32> to vector<2x16x16xf32>
    "tpu.trace_start"() <{level = 10 : i32, message = "bld,bdf->blf"}> : () -> ()
    %cst = arith.constant dense<0.000000e+00> : vector<2x12x16xf32>
    %8 = tpu.matmul %2, %7, %cst {dimension_numbers = #tpu.dot_dimension_numbers<[2], [1], [1], [2], [0, 0, 0, 1, 1, 2], [0], [0]>} : vector<2x12x16xf32>, vector<2x16x16xf32>, vector<2x12x16xf32> -> vector<2x12x16xf32>
    "tpu.trace_stop"() : () -> ()
    %9 = vector.extract_strided_slice %0 {offsets = [0, 1, 0], sizes = [2, 12, 16], strides = [1, 1, 1]} : vector<2x14x16xf32> to vector<2x12x16xf32>
    %10 = vector.extract_strided_slice %1 {offsets = [1, 0, 0], sizes = [1, 16, 16], strides = [1, 1, 1]} : vector<3x16x16xf32> to vector<1x16x16xf32>
    %11 = vector.shape_cast %10 : vector<1x16x16xf32> to vector<16x16xf32>
    %12 = vector.shape_cast %11 : vector<16x16xf32> to vector<1x16x16xf32>
    %13 = vector.shape_cast %12 : vector<1x16x16xf32> to vector<1x16x16xf32>
    %14 = vector.broadcast %13 : vector<1x16x16xf32> to vector<2x16x16xf32>
    "tpu.trace_start"() <{level = 10 : i32, message = "bld,bdf->blf"}> : () -> ()
    %cst_5 = arith.constant dense<0.000000e+00> : vector<2x12x16xf32>
    %15 = tpu.matmul %9, %14, %cst_5 {dimension_numbers = #tpu.dot_dimension_numbers<[2], [1], [1], [2], [0, 0, 0, 1, 1, 2], [0], [0]>} : vector<2x12x16xf32>, vector<2x16x16xf32>, vector<2x12x16xf32> -> vector<2x12x16xf32>
    "tpu.trace_stop"() : () -> ()
    %16 = arith.addf %8, %15 : vector<2x12x16xf32>
    %17 = vector.extract_strided_slice %0 {offsets = [0, 2, 0], sizes = [2, 12, 16], strides = [1, 1, 1]} : vector<2x14x16xf32> to vector<2x12x16xf32>
    %18 = vector.extract_strided_slice %1 {offsets = [2, 0, 0], sizes = [1, 16, 16], strides = [1, 1, 1]} : vector<3x16x16xf32> to vector<1x16x16xf32>
    %19 = vector.shape_cast %18 : vector<1x16x16xf32> to vector<16x16xf32>
    %20 = vector.shape_cast %19 : vector<16x16xf32> to vector<1x16x16xf32>
    %21 = vector.shape_cast %20 : vector<1x16x16xf32> to vector<1x16x16xf32>
    %22 = vector.broadcast %21 : vector<1x16x16xf32> to vector<2x16x16xf32>
    "tpu.trace_start"() <{level = 10 : i32, message = "bld,bdf->blf"}> : () -> ()
    %cst_6 = arith.constant dense<0.000000e+00> : vector<2x12x16xf32>
    %23 = tpu.matmul %17, %22, %cst_6 {dimension_numbers = #tpu.dot_dimension_numbers<[2], [1], [1], [2], [0, 0, 0, 1, 1, 2], [0], [0]>} : vector<2x12x16xf32>, vector<2x16x16xf32>, vector<2x12x16xf32> -> vector<2x12x16xf32>
    "tpu.trace_stop"() : () -> ()
    %24 = arith.addf %16, %23 : vector<2x12x16xf32>
    %c0_7 = arith.constant 0 : index
    %c0_8 = arith.constant 0 : index
    %25 = vector.load %arg3[%c0_7, %c0_8] : memref<1x16xf32, #tpu.memory_space<vmem>>, vector<1x16xf32>
    %26 = vector.shape_cast %25 : vector<1x16xf32> to vector<1x1x16xf32>
    %27 = vector.broadcast %26 : vector<1x1x16xf32> to vector<2x12x16xf32>
    %28 = arith.addf %24, %27 : vector<2x12x16xf32>
    %29 = tpu.iota {dimensions = array<i32: 0>} : vector<12x16xi32>
    %30 = tpu.iota {dimensions = array<i32: 1>} : vector<12x16xi32>
    %31 = tpu.iota {dimensions = array<i32: 1>} : vector<1x16xi32>
    %false = arith.constant false
    %32 = vector.broadcast %false : i1 to vector<12x16xi1>
    %cst_9 = arith.constant 0.000000e+00 : f32
    %33 = vector.broadcast %cst_9 : f32 to vector<1x16xf32>
    %c0_i32 = arith.constant 0 : i32
    %34 = vector.broadcast %c0_i32 : i32 to vector<12x16xi32>
    %35 = arith.cmpi sge, %30, %34 : vector<12x16xi32>
    %c8_i32 = arith.constant 8 : i32
    %36 = vector.broadcast %c8_i32 : i32 to vector<12x16xi32>
    %37 = arith.cmpi slt, %30, %36 : vector<12x16xi32>
    %38 = arith.andi %35, %37 : vector<12x16xi1>
    %c11_i32 = arith.constant 11 : i32
    %39 = vector.broadcast %c11_i32 : i32 to vector<12x16xi32>
    %40 = arith.cmpi slt, %29, %39 : vector<12x16xi32>
    %41 = arith.andi %38, %40 : vector<12x16xi1>
    %42 = arith.ori %32, %41 : vector<12x16xi1>
    %c0_i32_10 = arith.constant 0 : i32
    %43 = vector.broadcast %c0_i32_10 : i32 to vector<1x16xi32>
    %44 = arith.cmpi sge, %31, %43 : vector<1x16xi32>
    %c8_i32_11 = arith.constant 8 : i32
    %45 = vector.broadcast %c8_i32_11 : i32 to vector<1x16xi32>
    %46 = arith.cmpi slt, %31, %45 : vector<1x16xi32>
    %47 = arith.andi %44, %46 : vector<1x16xi1>
    %cst_12 = arith.constant 0.0909090936 : f32
    %cst_13 = arith.constant 0.000000e+00 : f32
    %48 = vector.broadcast %cst_12 : f32 to vector<1x16xf32>
    %49 = vector.broadcast %cst_13 : f32 to vector<1x16xf32>
    %50 = arith.select %47, %48, %49 : vector<1x16xi1>, vector<1x16xf32>
    %51 = arith.addf %33, %50 : vector<1x16xf32>
    %c8_i32_14 = arith.constant 8 : i32
    %52 = vector.broadcast %c8_i32_14 : i32 to vector<12x16xi32>
    %53 = arith.cmpi sge, %30, %52 : vector<12x16xi32>
    %c16_i32 = arith.constant 16 : i32
    %54 = vector.broadcast %c16_i32 : i32 to vector<12x16xi32>
    %55 = arith.cmpi slt, %30, %54 : vector<12x16xi32>
    %56 = arith.andi %53, %55 : vector<12x16xi1>
    %c10_i32 = arith.constant 10 : i32
    %57 = vector.broadcast %c10_i32 : i32 to vector<12x16xi32>
    %58 = arith.cmpi slt, %29, %57 : vector<12x16xi32>
    %59 = arith.andi %56, %58 : vector<12x16xi1>
    %60 = arith.ori %42, %59 : vector<12x16xi1>
    %c8_i32_15 = arith.constant 8 : i32
    %61 = vector.broadcast %c8_i32_15 : i32 to vector<1x16xi32>
    %62 = arith.cmpi sge, %31, %61 : vector<1x16xi32>
    %c16_i32_16 = arith.constant 16 : i32
    %63 = vector.broadcast %c16_i32_16 : i32 to vector<1x16xi32>
    %64 = arith.cmpi slt, %31, %63 : vector<1x16xi32>
    %65 = arith.andi %62, %64 : vector<1x16xi1>
    %cst_17 = arith.constant 1.000000e-01 : f32
    %cst_18 = arith.constant 0.000000e+00 : f32
    %66 = vector.broadcast %cst_17 : f32 to vector<1x16xf32>
    %67 = vector.broadcast %cst_18 : f32 to vector<1x16xf32>
    %68 = arith.select %65, %66, %67 : vector<1x16xi1>, vector<1x16xf32>
    %69 = arith.addf %51, %68 : vector<1x16xf32>
    %70 = vector.shape_cast %60 : vector<12x16xi1> to vector<1x12x16xi1>
    %cst_19 = arith.constant -3.40282347E+38 : f32
    %71 = vector.shape_cast %70 : vector<1x12x16xi1> to vector<1x12x16xi1>
    %72 = vector.broadcast %71 : vector<1x12x16xi1> to vector<2x12x16xi1>
    %73 = vector.broadcast %cst_19 : f32 to vector<2x12x16xf32>
    %74 = arith.select %72, %28, %73 : vector<2x12x16xi1>, vector<2x12x16xf32>
    %cst_20 = arith.constant dense<0xFF800000> : vector<2x16xf32>
    %75 = vector.multi_reduction <maximumf>, %74, %cst_20 [1] : vector<2x12x16xf32> to vector<2x16xf32>
    %cst_21 = arith.constant 0.000000e+00 : f32
    %76 = vector.broadcast %cst_21 : f32 to vector<2x12x16xf32>
    %77 = arith.subf %76, %28 : vector<2x12x16xf32>
    %cst_22 = arith.constant -3.40282347E+38 : f32
    %78 = vector.shape_cast %70 : vector<1x12x16xi1> to vector<1x12x16xi1>
    %79 = vector.broadcast %78 : vector<1x12x16xi1> to vector<2x12x16xi1>
    %80 = vector.broadcast %cst_22 : f32 to vector<2x12x16xf32>
    %81 = arith.select %79, %77, %80 : vector<2x12x16xi1>, vector<2x12x16xf32>
    %cst_23 = arith.constant dense<0xFF800000> : vector<2x16xf32>
    %82 = vector.multi_reduction <maximumf>, %81, %cst_23 [1] : vector<2x12x16xf32> to vector<2x16xf32>
    %cst_24 = arith.constant 0.000000e+00 : f32
    %83 = vector.shape_cast %70 : vector<1x12x16xi1> to vector<1x12x16xi1>
    %84 = vector.broadcast %83 : vector<1x12x16xi1> to vector<2x12x16xi1>
    %85 = vector.broadcast %cst_24 : f32 to vector<2x12x16xf32>
    %86 = arith.select %84, %28, %85 : vector<2x12x16xi1>, vector<2x12x16xf32>
    %cst_25 = arith.constant dense<0.000000e+00> : vector<2x16xf32>
    %87 = vector.multi_reduction <add>, %86, %cst_25 [1] : vector<2x12x16xf32> to vector<2x16xf32>
    %88 = vector.broadcast %69 : vector<1x16xf32> to vector<2x16xf32>
    %89 = arith.mulf %87, %88 : vector<2x16xf32>
    %cst_26 = arith.constant 0.000000e+00 : f32
    %90 = vector.broadcast %cst_26 : f32 to vector<2x80xf32>
    %91 = tpu.concatenate %75, %82, %89, %90 in 1 : vector<2x16xf32>, vector<2x16xf32>, vector<2x16xf32>, vector<2x80xf32> -> vector<2x128xf32>
    %92 = vector.shape_cast %91 : vector<2x128xf32> to vector<2x1x128xf32>
    %c0_27 = arith.constant 0 : index
    %c0_28 = arith.constant 0 : index
    %c0_29 = arith.constant 0 : index
    %93 = vector.load %arg4[%c0_27, %c0_28, %c0_29] : memref<2x1x128xf32, #tpu.memory_space<vmem>>, vector<2x1x128xf32>
    tpu.vector_store %arg4[%c0_27, %c0_28, %c0_29], %92 {strides = array<i32>} : memref<2x1x128xf32, #tpu.memory_space<vmem>>, vector<2x1x128xf32>,
    return
  }
  func.func @transform_0(%arg0: i32) -> (i32, i32, i32) {
    %c0_i32 = arith.constant 0 : i32
    %c0_i32_0 = arith.constant 0 : i32
    %c0_i32_1 = arith.constant 0 : i32
    return %arg0, %c0_i32, %c0_i32_0 : i32, i32, i32
  }
  func.func @transform_1(%arg0: i32) -> (i32, i32, i32) {
    %c0_i32 = arith.constant 0 : i32
    %c0_i32_0 = arith.constant 0 : i32
    %c0_i32_1 = arith.constant 0 : i32
    %c0_i32_2 = arith.constant 0 : i32
    return %c0_i32, %c0_i32_0, %c0_i32_1 : i32, i32, i32
  }
  func.func @transform_2(%arg0: i32) -> (i32, i32) {
    %c0_i32 = arith.constant 0 : i32
    %c0_i32_0 = arith.constant 0 : i32
    %c0_i32_1 = arith.constant 0 : i32
    return %c0_i32, %c0_i32_0 : i32, i32
  }
  func.func @transform_3(%arg0: i32) -> (i32, i32, i32) {
    %c0_i32 = arith.constant 0 : i32
    %c0_i32_0 = arith.constant 0 : i32
    %c0_i32_1 = arith.constant 0 : i32
    return %arg0, %c0_i32, %c0_i32_0 : i32, i32, i32
  }
}

</mosaic_0001>

<bundles_post_ra>
// kernel: tpu_custom_call.1
= control target key start
LH: loop header
LB: loop body
LE: loop exit
PB: predicated region body
PF: predicated region fallthrough
CT: control target
= control target key end

     0   :  { %vm31_vm0 = vcmask 130048   ;;  %vm27_vm1 = vcmask 1046528   ;;  %s556_s0 = inlined_call_operand.vmem [shape: f32[2,14,16], index: 0, kind: input, shape index: {}]   ;;  %s557_s1 = inlined_call_operand.vmem [shape: f32[3,16,16], index: 1, kind: input, shape index: {}]   ;;  %s558_s2 = inlined_call_operand.vmem [shape: f32[1,16], index: 2, kind: input, shape index: {}]   ;;  %s559_s3 = inlined_call_operand.hbm [shape: f32[2,1,128], index: 3, kind: output, shape index: {}]  }
   0x1   :  { %v22_v0 = vld [vmem:[%s557_s1 + $0x18] sm:$0xff]  ;;  %v21_v1 = vld [vmem:[%s557_s1 + $0x10] sm:$0xff]  ;;  %v16_v2 = vld [vmem:[%s556_s0 + $0x8] sm:$0x3f] }
   0x2   :  { %378 = vmatpush.msra.mxu2 %v22_v0  ;;  %380 = vmatpush.msra.mxu3 %v22_v0  ;;  %v29_v3 = vrot.slane %v16_v2, 1  ;;  %v18_v4 = vld [vmem:[%s556_s0 + $0x18] sm:$0x3f]  ;;  %v20_v6 = vld [vmem:[%s557_s1 + $0x8] sm:$0xff]  ;;  %v15_v7 = vld [vmem:[%s556_s0] sm:$0xff] }
   0x3   :  { %v62_v5 = vrot.slane %v18_v4, 1  ;;  %50 = vmatpush.msra.mxu0 %v22_v0  ;;  %82 = vmatpush.msra.mxu1 %v22_v0  ;;  %v17_v8 = vld [vmem:[%s556_s0 + $0x10] sm:$0xff]  ;;  %v28_v9 = vrot.slane %v15_v7, 1  ;;  %v19_v11 = vld [vmem:[%s557_s1] sm:$0xff] }
   0x4   :  { %379 = vmatpush.msra.mxu2 %v21_v1  ;;  %381 = vmatpush.msra.mxu3 %v21_v1  ;;  %v61_v10 = vrot.slane %v17_v8, 1 }
   0x5   :  { %367 = vmatmul.msk.f32.vlgmr.msra.gmra.mxu2 %vm31_vm0, %v29_v3  ;;  %369 = vmatmul.msk.f32.vlgmr.msra.gmra.mxu3 %vm31_vm0, %v62_v5 }
   0x6   :  { %8 = vsyncpa [#allocation3], 0  ;;  %109 = vmatpush.msrb.mxu2 %v20_v6  ;;  %136 = vmatpush.msrb.mxu3 %v20_v6  ;;  %v30_v12 = vsel %vm27_vm1, %v28_v9, %v29_v3  ;;  %v63_v13 = vsel %vm27_vm1, %v61_v10, %v62_v5  ;;  %v24_v14 = vld [vmem:[%s557_s1 + $0x28] sm:$0xff]  ;;  %v23_v15 = vld [vmem:[%s557_s1 + $0x20] sm:$0xff]  ;;  %v146_v16 = vrot.slane %v15_v7, 2  ;;  %v147_v17 = vrot.slane %v16_v2, 2 }
   0x7   :  { %51 = vmatpush.msra.mxu0 %v21_v1  ;;  %83 = vmatpush.msra.mxu1 %v21_v1  ;;  %v176_v18 = vrot.slane %v17_v8, 2  ;;  %v177_v19 = vrot.slane %v18_v4, 2  ;;  %vm145_vm2 = vcmask 1045504   ;;  %v218_v24 = vlaneseq  ;;  %v387_v35 = vld [vmem:[%s558_s2] ss:$0 sm:$0xff]  ;;  %s415_s2 = smov 16  }
   0x8   :  { %110 = vmatpush.msrb.mxu2 %v19_v11  ;;  %137 = vmatpush.msrb.mxu3 %v19_v11  ;;  %v148_v20 = vsel %vm145_vm2, %v146_v16, %v147_v17  ;;  %vm252_vm13 = vcmask 125952   ;;  %vm322_vm14 = vcmask 1041409   ;;  %s416_s5 = smov 32   ;;  %vm339_vm15 = vcmask 261120   ;;  %s354_s8 = sshll.u32 %s559_s3, 4  ;;  %s355_s8 = int_to_ptr.hbm [resolvable:$true] %s354_s8 }
   0x9   :  { %366 = vmatmul.msk.f32.vlgmr.msra.gmra.mxu0 %vm31_vm0, %v30_v12  ;;  %368 = vmatmul.msk.f32.vlgmr.msra.gmra.mxu1 %vm31_vm0, %v63_v13  ;;  %v178_v21 = vsel %vm145_vm2, %v176_v18, %v177_v19  ;;  %v481_v27 = vand.u32 127, %v218_v24  ;;  %v219_v28 = vshrl.u32 %v218_v24, 7  ;;  %vm341_vm1 = vcmask 392192   ;;  %s417_s9 = smov [#allocation2]   ;;  %s418_s11 = smov 1  }
   0xa   :  { %167 = vmatpush.msrb.mxu0 %v24_v14  ;;  %197 = vmatpush.msrb.mxu1 %v24_v14  ;;  %s352_s10 = sshll.u32 %s417_s9, 4  ;;  %s353_s10 = int_to_ptr.vmem [resolvable:$true] %s352_s10 }
   0xb   :  { %vm232_vm3 = vcmp.ge.s32.totalorder %v481_v27, 8  ;;  %vm233_vm4 = vcmp.lt.s32.totalorder %v481_v27, 16  ;;  %vm224_vm5 = vcmp.lt.s32.totalorder %v481_v27, 8  ;;  %v220_v37 = vadd.s32 8, %v219_v28 }
   0xc   :  { %168 = vmatpush.msrb.mxu0 %v23_v15  ;;  %198 = vmatpush.msrb.mxu1 %v23_v15  ;;  %vm489_vm6 = vmand %vm232_vm3, %vm233_vm4 }
   0xd   :  { %370 = vmatmul.msk.f32.vlgmr.msrb.gmra.mxu2 %vm31_vm0, %v15_v7  ;;  %372 = vmatmul.msk.f32.vlgmr.msrb.gmra.mxu3 %vm31_vm0, %v17_v8  ;;  %vm497_vm7 = vmor %vm224_vm5, %vm489_vm6  ;;  %vm227_vm8 = vcmp.lt.s32.totalorder %v220_v37, 11  ;;  %vm236_vm9 = vcmp.lt.s32.totalorder %v220_v37, 10 }
   0xe   :  { %vm229_vm10 = vmand %vm224_vm5, %vm227_vm8 }
   0xf   :  { %vm238_vm11 = vmand %vm489_vm6, %vm236_vm9 }
  0x10   :  { %vm513_vm12 = vmor %vm229_vm10, %vm238_vm11 }
  0x11   :  { %374 = vmatmul.msk.f32.vlgmr.msrb.gmra.mxu0 %vm31_vm0, %v148_v20  ;;  %376 = vmatmul.msk.f32.vlgmr.msrb.gmra.mxu1 %vm31_vm0, %v178_v21 }
  0x15   :  { %371 = vmatmul.msk.f32.gmra.mxu2 %vm31_vm0, %v16_v2  ;;  %373 = vmatmul.msk.f32.gmra.mxu3 %vm31_vm0, %v18_v4 }
  0x19   :  { %375 = vmatmul.msk.f32.gmra.mxu0 %vm31_vm0, %v147_v17  ;;  %377 = vmatmul.msk.f32.gmra.mxu1 %vm31_vm0, %v177_v19 }
  0x86   :  { %v53_v22 = vpop.f32.mrf.mxu0  ;;  %v85_v23 = vpop.f32.mrf.mxu1 }
  0x88   :  { %v56_v25 = vpop.f32.mrf.mxu2  ;;  %v88_v26 = vpop.f32.mrf.mxu3 }
  0x8e   :  { %v170_v29 = vpop.f32.mrf.mxu0  ;;  %v200_v30 = vpop.f32.mrf.mxu1 }
  0x90   :  { %v112_v31 = vpop.f32.mrf.mxu2  ;;  %v139_v32 = vpop.f32.mrf.mxu3 }
  0x91   :  { %v113_v33 = vadd.f32 %v112_v31, %v53_v22  ;;  %v140_v34 = vadd.f32 %v139_v32, %v85_v23 }
  0x93   :  { %v206_v38 = vadd.f32 %v170_v29, %v113_v33  ;;  %v208_v39 = vadd.f32 %v200_v30, %v140_v34 }
  0x95   :  { %v214_v41 = vadd.f32 %v387_v35, %v206_v38  ;;  %v216_v42 = vadd.f32 %v387_v35, %v208_v39 }
  0x96   :  { %v173_v46 = vpop.f32.mrf.mxu0  ;;  %v203_v47 = vpop.f32.mrf.mxu1 }
  0x97   :  { %v247_v43 = vsel %vm497_vm7, %v214_v41, -3.4028235e+38  ;;  %v270_v44 = vsub.f32 0.0, %v214_v41  ;;  %v249_v45 = vsel %vm497_vm7, %v216_v42, -3.4028235e+38  ;;  %v296_v52 = vsel %vm497_vm7, %v214_v41, 0.0 }
  0x98   :  { %v115_v48 = vpop.f32.mrf.mxu2  ;;  %v142_v49 = vpop.f32.mrf.mxu3  ;;  %v272_v53 = vsub.f32 0.0, %v216_v42  ;;  %v251_v58 = vsel %vm31_vm0, %v247_v43, -inf  ;;  %v300_v59 = vsel %vm31_vm0, %v296_v52, 0.0  ;;  %v261_v63 = vsel %vm31_vm0, %v249_v45, -inf }
  0x99   :  { %v116_v50 = vadd.f32 %v115_v48, %v56_v25  ;;  %v143_v51 = vadd.f32 %v142_v49, %v88_v26  ;;  %v274_v54 = vsel %vm497_vm7, %v270_v44, -3.4028235e+38  ;;  %v298_v1 = vsel %vm497_vm7, %v216_v42, 0.0 }
  0x9a   :  { %v278_v62 = vsel %vm31_vm0, %v274_v54, -inf  ;;  %v276_v0 = vsel %vm497_vm7, %v272_v53, -3.4028235e+38  ;;  %v309_v22 = vsel %vm31_vm0, %v298_v1, 0.0  ;;  %v414_v45 = vmov 0.0  }
  0x9b   :  { %v207_v55 = vadd.f32 %v173_v46, %v116_v50  ;;  %v209_v56 = vadd.f32 %v203_v47, %v143_v51  ;;  %v287_v14 = vsel %vm31_vm0, %v276_v0, -inf  ;;  %v230_v46 = vsel %vm224_vm5, 0.09090909, %v414_v45 }
  0x9c   :  { %v241_v52 = vsel %vm489_vm6, 0.1, %v414_v45 }
  0x9d   :  { %v215_v60 = vadd.f32 %v387_v35, %v207_v55  ;;  %v217_v61 = vadd.f32 %v387_v35, %v209_v56 }
  0x9f   :  { %v248_v2 = vsel %vm513_vm12, %v215_v60, -3.4028235e+38  ;;  %v271_v3 = vsub.f32 0.0, %v215_v60  ;;  %v297_v4 = vsel %vm513_vm12, %v215_v60, 0.0  ;;  %v250_v5 = vsel %vm513_vm12, %v217_v61, -3.4028235e+38 }
  0xa0   :  { %v253_v6 = vsel %vm252_vm13, %v248_v2, -inf  ;;  %v301_v7 = vsel %vm252_vm13, %v297_v4, 0.0  ;;  %v262_v8 = vsel %vm252_vm13, %v250_v5, -inf  ;;  %v273_v9 = vsub.f32 0.0, %v217_v61 }
  0xa1   :  { %v254_v10 = vmax.f32 %v251_v58, %v253_v6  ;;  %v275_v11 = vsel %vm513_vm12, %v271_v3, -3.4028235e+38  ;;  %v302_v12 = vadd.f32 %v301_v7, %v300_v59  ;;  %v263_v13 = vmax.f32 %v261_v63, %v262_v8 }
  0xa2   :  { %v279_v15 = vsel %vm252_vm13, %v275_v11, -inf  ;;  %v277_v16 = vsel %vm513_vm12, %v273_v9, -3.4028235e+38  ;;  %v299_v17 = vsel %vm513_vm12, %v217_v61, 0.0  ;;  %v242_v59 = vadd.f32 %v241_v52, %v230_v46 }
  0xa3   :  { %v255_v18 = vrot.slane %v254_v10, 4  ;;  %v303_v19 = vrot.slane %v302_v12, 4  ;;  %v264_v20 = vrot.slane %v263_v13, 4  ;;  %v288_v21 = vsel %vm252_vm13, %v277_v16, -inf }
  0xa4   :  { %v310_v23 = vsel %vm252_vm13, %v299_v17, 0.0  ;;  %v280_v24 = vmax.f32 %v278_v62, %v279_v15  ;;  %v289_v25 = vmax.f32 %v287_v14, %v288_v21 }
  0xa5   :  { %v256_v26 = vmax.f32 %v254_v10, %v255_v18  ;;  %v304_v28 = vadd.f32 %v303_v19, %v302_v12  ;;  %v265_v29 = vmax.f32 %v263_v13, %v264_v20  ;;  %v311_v30 = vadd.f32 %v310_v23, %v309_v22 }
  0xa6   :  { %v281_v31 = vrot.slane %v280_v24, 4  ;;  %v290_v32 = vrot.slane %v289_v25, 4 }
  0xa7   :  { %v312_v33 = vrot.slane %v311_v30, 4  ;;  %v266_v34 = vrot.slane %v265_v29, 2  ;;  %v257_v35 = vrot.slane %v256_v26, 2  ;;  %v305_v39 = vrot.slane %v304_v28, 2 }
  0xa8   :  { %v282_v37 = vmax.f32 %v280_v24, %v281_v31  ;;  %v291_v38 = vmax.f32 %v289_v25, %v290_v32 }
  0xa9   :  { %v313_v40 = vadd.f32 %v312_v33, %v311_v30  ;;  %v267_v41 = vmax.f32 %v265_v29, %v266_v34  ;;  %v258_v42 = vmax.f32 %v256_v26, %v257_v35  ;;  %v306_v53 = vadd.f32 %v305_v39, %v304_v28 }
  0xaa   :  { %v283_v43 = vrot.slane %v282_v37, 2  ;;  %v292_v44 = vrot.slane %v291_v38, 2 }
  0xab   :  { %v314_v47 = vrot.slane %v313_v40, 2  ;;  %v268_v48 = vrot.slane %v267_v41, 1  ;;  %v259_v49 = vrot.slane %v258_v42, 1  ;;  %v307_v63 = vrot.slane %v306_v53, 1 }
  0xac   :  { %v284_v50 = vmax.f32 %v282_v37, %v283_v43  ;;  %v293_v51 = vmax.f32 %v291_v38, %v292_v44 }
  0xad   :  { %v315_v54 = vadd.f32 %v314_v47, %v313_v40  ;;  %v269_v55 = vmax.f32 %v267_v41, %v268_v48  ;;  %v260_v56 = vmax.f32 %v258_v42, %v259_v49  ;;  %v308_v2 = vadd.f32 %v307_v63, %v306_v53 }
  0xae   :  { %v285_v57 = vrot.slane %v284_v50, 1  ;;  %v294_v58 = vrot.slane %v293_v51, 1 }
  0xaf   :  { %v316_v60 = vrot.slane %v315_v54, 1  ;;  %v323_v61 = vsel %vm322_vm14, %v269_v55, %v260_v56  ;;  %v318_v4 = vmul.f32 %v308_v2, %v242_v59 }
  0xb0   :  { %v286_v27 = vmax.f32 %v284_v50, %v285_v57  ;;  %v295_v62 = vmax.f32 %v293_v51, %v294_v58 }
  0xb1   :  { %v317_v0 = vadd.f32 %v316_v60, %v315_v54 }
  0xb2   :  { %v327_v1 = vsel %vm322_vm14, %v295_v62, %v286_v27 }
  0xb3   :  { %328 = vrot.lane.b32.xlu0 %v327_v1, %s415_s2  ;;  %v319_v36 = vmul.f32 %v317_v0, %v242_v59 }
  0xb5   :  { %v333_v3 = vrot.slane %v319_v36, 7 }
  0xb7   :  { %v334_v5 = vsel %vm322_vm14, %v333_v3, %v318_v4 }
  0xbb   :  { %335 = vrot.lane.b32.xlu0 %v334_v5, %s416_s5 }
 0x125   :  { %v329_v6 = vpop.permute.xlu0 %328 }
 0x126   :  { %v338_v7 = vsel %vm31_vm0, %v323_v61, %v329_v6 }
 0x12d   :  { %v336_v8 = vpop.permute.xlu0 %335 }
 0x12e   :  { %v340_v9 = vsel %vm339_vm15, %v338_v7, %v336_v8 }
 0x12f   :  { %v342_v10 = vsel %vm341_vm1, %v340_v9, 0.0 }
 0x130   :  { %v344_v11 = vrot.slane %v342_v10, 1  ;;  %346 = vst [vmem:[#allocation2] sm:$0x1] %v342_v10 }
 0x132   :  { %347 = vst [vmem:[#allocation2 + $0x1] sm:$0x1] %v344_v11 }
 0x133   :  { %360 = dma.vmem_to_hbm [thread:$0]  %s353_s10, 32, %s355_s8, [#allocation3], %s415_s2, %s415_s2, %s418_s11  }
 0x134   :  { %412 = dma.done.wait [#allocation3], 32  }
 0x135   :  { %413 = vsyncadd [#allocation3], 4294967264 }
 0x136   :  { %365 = vsyncpa [#allocation3], 1 }

</bundles_post_ra>
